<compile_context>
chip_gen: v7x
topology: tpu7x:2x2x1
jax: 0.10.0
libtpu: 0.0.40
codegen_flags: <defaults>
</compile_context>

<pallas_src>
import numpy as np
import jax
import jax.numpy as jnp
from jax.experimental import pallas as pl
from jax.experimental.pallas import tpu as pltpu  # noqa: F401  (no scratch needed anymore)

# ---- model hyper-parameters (from the PyTorch __init__) --------------------
IN_C = 1
OUT_C = 11
KD, KH, KW = 4, 1, 3
PAD_D, PAD_H, PAD_W = 3, 0, 1
AVG_K, AVG_S = 3, 3
MAX_K, MAX_S = 3, 2
SCALE = 0.2
# spatial extent of one (avg-pool ∘ conv) fused patch
AH = AVG_K + KH - 1           # 3
AW = AVG_K + KW - 1           # 5


def _pool_out(n, k, s):
    return (n - k) // s + 1


# ---- Pallas kernel ----------------------------------------------------------
def _make_kernel(W2, H3, W3):
    """Kernel factory; static pooled-grid dims are closed over."""

    def kernel(lhs_ref, rhs_ref, b_ref, o_ref):
        # lhs_ref: (H2*W2, COLS)    fused (conv∘avgpool) im2col patches of x_pad
        # rhs_ref: (COLS, Dout*C)   block-diagonal-over-D effective weights
        # b_ref  : (1, Dout*C)      bias, tiled over D
        # o_ref  : (H3*W3, Dout*C)  final output (already scaled by 0.2)

        # ConvTranspose3d + AvgPool2d fused into one MXU matmul.
        v2 = jnp.dot(lhs_ref[...], rhs_ref[...],
                     preferred_element_type=jnp.float32,
                     precision=jax.lax.Precision.HIGHEST) + b_ref[...]
        # v2 rows are indexed by (h2*W2 + w2); lanes by (d*C + c).

        # MaxPool2d(3, stride=2) over the pooled (H2, W2) grid, then scale.
        outs = []
        for oh in range(H3):
            for ow in range(W3):
                m = None
                for i in range(MAX_K):               # rows for one H offset are contiguous
                    start = (oh * MAX_S + i) * W2 + ow * MAX_S
                    run = jnp.max(v2[start:start + MAX_K, :], axis=0, keepdims=True)
                    m = run if m is None else jnp.maximum(m, run)
                outs.append(m)                        # (1, Dout*C)
        res = outs[0] if len(outs) == 1 else jnp.concatenate(outs, axis=0)
        o_ref[...] = SCALE * res                      # single dense store

    return kernel


# ---- wrapper (everything fused under one jit) -------------------------------
def _model_forward_impl(x, weight, bias):
    """x: (1, 1, D, H, W) f32; weight: (1, OUT_C, KD, KH, KW); bias: (OUT_C,).
    Returns (1, OUT_C, Dout, H3, W3) f32, matching the PyTorch module."""
    N, Ci, D, H, W = x.shape
    assert N == 1 and Ci == IN_C

    # transposed-conv output dims (stride 1)
    Dout = (D - 1) - 2 * PAD_D + KD
    Hout = (H - 1) - 2 * PAD_H + KH
    Wout = (W - 1) - 2 * PAD_W + KW
    H2, W2 = _pool_out(Hout, AVG_K, AVG_S), _pool_out(Wout, AVG_K, AVG_S)
    H3, W3 = _pool_out(H2, MAX_K, MAX_S), _pool_out(W2, MAX_K, MAX_S)
    assert Dout >= 1 and H2 >= 1 and W2 >= 1 and H3 >= 1 and W3 >= 1

    x = x.astype(jnp.float32)
    weight = weight.astype(jnp.float32)
    bias = bias.astype(jnp.float32)

    # glue: re-pad so the stride-1 transposed conv becomes a plain correlation
    pd, ph, pw = KD - 1 - PAD_D, KH - 1 - PAD_H, KW - 1 - PAD_W
    x_pad = jnp.pad(x[0, 0], ((pd, pd), (ph, ph), (pw, pw)))     # (Dp, Hp, Wp)

    # --- im2col for the fused (conv-transpose -> avg-pool) linear map --------
    # lhs[(h2*W2+w2), ((d*KD+kd)*AH+a)*AW+b] = x_pad[d+kd, h2*S+a, w2*S+b]
    dk = (jnp.arange(Dout)[:, None] + jnp.arange(KD)[None, :]).reshape(-1)   # (Dout*KD,)
    hh = jnp.arange(H2)[:, None] * AVG_S + jnp.arange(AH)[None, :]           # (H2, AH)
    ww = jnp.arange(W2)[:, None] * AVG_S + jnp.arange(AW)[None, :]           # (W2, AW)
    g = x_pad[dk[None, None, :, None, None],
              hh[:, None, None, :, None],
              ww[None, :, None, None, :]]                                    # (H2,W2,Dout*KD,AH,AW)
    lhs = g.reshape(H2 * W2, Dout * KD * AH * AW)

    # --- effective weight: flipped kernel pre-convolved with the avg window --
    wfl = jnp.transpose(jnp.flip(weight[0], axis=(1, 2, 3)), (1, 2, 3, 0))   # (KD,KH,KW,C)
    weff = jnp.zeros((KD, AH, AW, OUT_C), jnp.float32)
    for kh in range(KH):
        for kw in range(KW):
            weff = weff.at[:, kh:kh + AVG_K, kw:kw + AVG_K, :].add(
                wfl[:, kh, kw, :][:, None, None, :])
    weff = weff / float(AVG_K * AVG_K)
    blk = weff.reshape(KD * AH * AW, OUT_C)                                  # (KD*AH*AW, C)
    # block-diagonal over the output-depth axis so one 2-D matmul covers all D
    rhs = jnp.einsum('ij,kc->ikjc', jnp.eye(Dout, dtype=jnp.float32), blk)
    rhs = rhs.reshape(Dout * KD * AH * AW, Dout * OUT_C)                     # (COLS, Dout*C)
    brow = jnp.tile(bias, (Dout,)).reshape(1, Dout * OUT_C)                  # (1, Dout*C)

    DC = Dout * OUT_C
    out_flat = pl.pallas_call(
        _make_kernel(W2, H3, W3),
        out_shape=jax.ShapeDtypeStruct((H3 * W3, DC), jnp.float32),
        grid=(1,),
        in_specs=[
            pl.BlockSpec(lhs.shape, lambda i: (0, 0)),
            pl.BlockSpec(rhs.shape, lambda i: (0, 0)),
            pl.BlockSpec(brow.shape, lambda i: (0, 0)),
        ],
        out_specs=pl.BlockSpec((H3 * W3, DC), lambda i: (0, 0)),
    )(lhs, rhs, brow)

    # (H3*W3, Dout*C) -> NCDHW (1, C, Dout, H3, W3)
    out = out_flat.reshape(H3, W3, Dout, OUT_C).transpose(3, 2, 0, 1)[None]
    return out


model_forward = jax.jit(_model_forward_impl)


# ---- independent numpy reference (straight from the op definitions) --------
def _ref_forward(x, weight, bias):
    x = np.asarray(x, np.float64)
    w = np.asarray(weight, np.float64)
    b = np.asarray(bias, np.float64)
    N, _, D, H, W = x.shape
    Co = w.shape[1]
    Dout = (D - 1) - 2 * PAD_D + KD
    Hout = (H - 1) - 2 * PAD_H + KH
    Wout = (W - 1) - 2 * PAD_W + KW
    v1 = np.tile(b[None, :, None, None, None], (N, 1, Dout, Hout, Wout))
    for od in range(Dout):
        for oh in range(Hout):
            for ow in range(Wout):
                for kd in range(KD):
                    idd = od - kd + PAD_D
                    if not (0 <= idd < D):
                        continue
                    for kh in range(KH):
                        ih = oh - kh + PAD_H
                        if not (0 <= ih < H):
                            continue
                        for kw in range(KW):
                            iw = ow - kw + PAD_W
                            if not (0 <= iw < W):
                                continue
                            v1[0, :, od, oh, ow] += x[0, 0, idd, ih, iw] * w[0, :, kd, kh, kw]
    H2, W2 = _pool_out(Hout, AVG_K, AVG_S), _pool_out(Wout, AVG_K, AVG_S)
    v2 = np.zeros((N, Co, Dout, H2, W2))
    for oh in range(H2):
        for ow in range(W2):
            v2[..., oh, ow] = v1[..., oh * AVG_S:oh * AVG_S + AVG_K,
                                 ow * AVG_S:ow * AVG_S + AVG_K].mean(axis=(-1, -2))
    H3, W3 = _pool_out(H2, MAX_K, MAX_S), _pool_out(W2, MAX_K, MAX_S)
    v3 = np.zeros((N, Co, Dout, H3, W3))
    for oh in range(H3):
        for ow in range(W3):
            v3[..., oh, ow] = v2[..., oh * MAX_S:oh * MAX_S + MAX_K,
                                 ow * MAX_S:ow * MAX_S + MAX_K].max(axis=(-1, -2))
    return SCALE * v3


if __name__ == "__main__":
    key = jax.random.PRNGKey(0)
    kx, kw, kb = jax.random.split(key, 3)

    # input (NCDHW): N=1, Cin=1, D=8, H=12, W=12  (spatial size chosen so that
    # every stage of the conv-transpose -> avgpool -> maxpool chain is valid)
    x = jax.random.normal(kx, (1, IN_C, 8, 12, 12), jnp.float32)
    # ConvTranspose3d parameters: weight (in_c, out_c, kD, kH, kW), bias (out_c,)
    weight = 0.1 * jax.random.normal(kw, (IN_C, OUT_C, KD, KH, KW), jnp.float32)
    bias = 0.1 * jax.random.normal(kb, (OUT_C,), jnp.float32)

    out = jax.block_until_ready(model_forward(x, weight, bias))

    ref = _ref_forward(x, weight, bias)
    np.testing.assert_allclose(np.asarray(out), ref, rtol=1e-4, atol=1e-5)
    print("KERNEL_OK")
</pallas_src>

<mosaic_0001>
module attributes {stable_mosaic.version = 11 : i64} {
  func.func @kernel(%arg0: i32, %arg1: memref<16x300xf32, #tpu.memory_space<vmem>>, %arg2: memref<300x55xf32, #tpu.memory_space<vmem>>, %arg3: memref<1x55xf32, #tpu.memory_space<vmem>>, %arg4: memref<1x55xf32, #tpu.memory_space<vmem>>) attributes {dimension_semantics = [#tpu.dimension_semantics<arbitrary>], iteration_bounds = array<i64: 1>, scalar_prefetch = 0 : i64, scratch_operands = 0 : i64, tpu.core_type = #tpu.core_type<tc>, window_params = [{pipeline_mode = #tpu.pipeline_mode<synchronous>, transform_indices = @transform_0, window_bounds = array<i64: 16, 300>}, {pipeline_mode = #tpu.pipeline_mode<synchronous>, transform_indices = @transform_1, window_bounds = array<i64: 300, 55>}, {pipeline_mode = #tpu.pipeline_mode<synchronous>, transform_indices = @transform_2, window_bounds = array<i64: 1, 55>}, {pipeline_mode = #tpu.pipeline_mode<synchronous>, transform_indices = @transform_3, window_bounds = array<i64: 1, 55>}]} {
    %c0 = arith.constant 0 : index
    %c0_0 = arith.constant 0 : index
    %0 = vector.load %arg1[%c0, %c0_0] : memref<16x300xf32, #tpu.memory_space<vmem>>, vector<16x300xf32>
    %c0_1 = arith.constant 0 : index
    %c0_2 = arith.constant 0 : index
    %1 = vector.load %arg2[%c0_1, %c0_2] : memref<300x55xf32, #tpu.memory_space<vmem>>, vector<300x55xf32>
    %cst = arith.constant dense<0.000000e+00> : vector<16x55xf32>
    %2 = tpu.matmul %0, %1, %cst {dimension_numbers = #tpu.dot_dimension_numbers<[1], [0], [0], [1], [0, 0, 1, 1], [], []>, precision = #tpu.contract_precision<fp32>} : vector<16x300xf32>, vector<300x55xf32>, vector<16x55xf32> -> vector<16x55xf32>
    %c0_3 = arith.constant 0 : index
    %c0_4 = arith.constant 0 : index
    %3 = vector.load %arg3[%c0_3, %c0_4] : memref<1x55xf32, #tpu.memory_space<vmem>>, vector<1x55xf32>
    %4 = vector.broadcast %3 : vector<1x55xf32> to vector<16x55xf32>
    %5 = arith.addf %2, %4 : vector<16x55xf32>
    %6 = vector.extract_strided_slice %5 {offsets = [0, 0], sizes = [3, 55], strides = [1, 1]} : vector<16x55xf32> to vector<3x55xf32>
    %cst_5 = arith.constant dense<0xFF800000> : vector<55xf32>
    %7 = vector.multi_reduction <maximumf>, %6, %cst_5 [0] : vector<3x55xf32> to vector<55xf32>
    %8 = vector.shape_cast %7 : vector<55xf32> to vector<1x55xf32>
    %9 = vector.extract_strided_slice %5 {offsets = [4, 0], sizes = [3, 55], strides = [1, 1]} : vector<16x55xf32> to vector<3x55xf32>
    %cst_6 = arith.constant dense<0xFF800000> : vector<55xf32>
    %10 = vector.multi_reduction <maximumf>, %9, %cst_6 [0] : vector<3x55xf32> to vector<55xf32>
    %11 = vector.shape_cast %10 : vector<55xf32> to vector<1x55xf32>
    %12 = arith.maximumf %8, %11 : vector<1x55xf32>
    %13 = vector.extract_strided_slice %5 {offsets = [8, 0], sizes = [3, 55], strides = [1, 1]} : vector<16x55xf32> to vector<3x55xf32>
    %cst_7 = arith.constant dense<0xFF800000> : vector<55xf32>
    %14 = vector.multi_reduction <maximumf>, %13, %cst_7 [0] : vector<3x55xf32> to vector<55xf32>
    %15 = vector.shape_cast %14 : vector<55xf32> to vector<1x55xf32>
    %16 = arith.maximumf %12, %15 : vector<1x55xf32>
    %cst_8 = arith.constant 2.000000e-01 : f32
    %17 = vector.broadcast %cst_8 : f32 to vector<1x55xf32>
    %18 = arith.mulf %17, %16 : vector<1x55xf32>
    %c0_9 = arith.constant 0 : index
    %c0_10 = arith.constant 0 : index
    %19 = vector.load %arg4[%c0_9, %c0_10] : memref<1x55xf32, #tpu.memory_space<vmem>>, vector<1x55xf32>
    tpu.vector_store %arg4[%c0_9, %c0_10], %18 {strides = array<i32>} : memref<1x55xf32, #tpu.memory_space<vmem>>, vector<1x55xf32>,
    return
  }
  func.func @transform_0(%arg0: i32) -> (i32, i32) {
    %c0_i32 = arith.constant 0 : i32
    %c0_i32_0 = arith.constant 0 : i32
    %c0_i32_1 = arith.constant 0 : i32
    return %c0_i32, %c0_i32_0 : i32, i32
  }
  func.func @transform_1(%arg0: i32) -> (i32, i32) {
    %c0_i32 = arith.constant 0 : i32
    %c0_i32_0 = arith.constant 0 : i32
    %c0_i32_1 = arith.constant 0 : i32
    return %c0_i32, %c0_i32_0 : i32, i32
  }
  func.func @transform_2(%arg0: i32) -> (i32, i32) {
    %c0_i32 = arith.constant 0 : i32
    %c0_i32_0 = arith.constant 0 : i32
    %c0_i32_1 = arith.constant 0 : i32
    return %c0_i32, %c0_i32_0 : i32, i32
  }
  func.func @transform_3(%arg0: i32) -> (i32, i32) {
    %c0_i32 = arith.constant 0 : i32
    %c0_i32_0 = arith.constant 0 : i32
    %c0_i32_1 = arith.constant 0 : i32
    return %c0_i32, %c0_i32_0 : i32, i32
  }
}

</mosaic_0001>

<bundles_post_ra>
// kernel: tile.8
= control target key start
LH: loop header
LB: loop body
LE: loop exit
PB: predicated region body
PF: predicated region fallthrough
CT: control target
= control target key end

     0   :  { %s22_s0 = inlined_call_operand.vmem [shape: f32[11], index: 0, kind: input, shape index: {}]   ;;  %s23_s1 = inlined_call_operand.vmem [shape: f32[5,11], index: 1, kind: output, shape index: {}]  }
   0x1   :  { %v4_v0 = vld [vmem:[%s22_s0] ss:$0 sm:$0xff] }
   0x2   :  { %5 = vst [vmem:[%s23_s1] sm:$0xff] %v4_v0 }

// kernel: tile.9
= control target key start
LH: loop header
LB: loop body
LE: loop exit
PB: predicated region body
PF: predicated region fallthrough
CT: control target
= control target key end

     0   :  { %s43_s10 = smov 44   ;;  %s44_s11 = smov 22   ;;  %vm3_vm0 = vcmask 89088   ;;  %vm9_vm1 = vcmask 449888   ;;  %vm15_vm2 = vcmask 359688   ;;  %vm21_vm3 = vcmask 269488   ;;  %s75_s0 = inlined_call_operand.vmem [shape: f32[5,11], index: 0, kind: input, shape index: {}]   ;;  %s76_s1 = inlined_call_operand.vmem [shape: f32[1,55], index: 1, kind: output, shape index: {}]  }
   0x1   :  { %v35_v0 = vld [vmem:[%s75_s0 + $0x4] sm:$0x1]   ;;  %v37_v1 = vld [vmem:[%s75_s0 + $0x2] sm:$0x1]   ;;  %v36_v2 = vld [vmem:[%s75_s0 + $0x3] sm:$0x1]  }
   0x2   :  { %7 = vrot.lane.b32.xlu0 %v35_v0, %s43_s10  ;;  %19 = vrot.lane.b32.xlu1 %v37_v1, %s44_s11  ;;  %v38_v3 = vld [vmem:[%s75_s0 + $0x1] sm:$0x1]   ;;  %v2_v4 = vld [vmem:[%s75_s0] sm:$0x1]   ;;  %s45_s0 = smov 33   ;;  %s46_s18 = smov 11  }
   0x3   :  { %4 = vst.msk [vmem:[#allocation0] sm:$0x1] %vm3_vm0, %v2_v4   ;;  %vm27_vm4 = vcmask 179288  }
   0x6   :  { %13 = vrot.lane.b32.xlu0 %v36_v2, %s45_s0  ;;  %25 = vrot.lane.b32.xlu1 %v38_v3, %s46_s18 }
  0x74   :  { %v8_v5 = vpop.permute.xlu0 %7   ;;  %v20_v6 = vpop.permute.xlu1 %19  }
  0x75   :  { %10 = vst.msk [vmem:[#allocation0] sm:$0x1] %vm9_vm1, %v8_v5  }
  0x78   :  { %v14_v7 = vpop.permute.xlu0 %13   ;;  %v26_v8 = vpop.permute.xlu1 %25  }
  0x79   :  { %16 = vst.msk [vmem:[#allocation0] sm:$0x1] %vm15_vm2, %v14_v7  }
  0x7a   :  { %22 = vst.msk [vmem:[#allocation0] sm:$0x1] %vm21_vm3, %v20_v6  }
  0x7b   :  { %28 = vst.msk [vmem:[#allocation0] sm:$0x1] %vm27_vm4, %v26_v8  }
  0x82   :  { %v32_v9 = vld [vmem:[#allocation0] sm:$0x1] }
  0x83   :  { %34 = vst [vmem:[%s76_s1] sm:$0x1] %v32_v9 }

// kernel: _model_forward_impl.1
= control target key start
LH: loop header
LB: loop body
LE: loop exit
PB: predicated region body
PF: predicated region fallthrough
CT: control target
= control target key end

     0   :  { %vm72_vm0 = vcmask 1043456   ;;  %vm65_vm1 = vcmask 359424   ;;  %vm1548_vm2 = vcmask 444416   ;;  %vm1556_vm3 = vcmask 448516   ;;  %s2800_s1 = inlined_call_operand.vmem [shape: f32[300,55], index: 1, kind: input, shape index: {}]   ;;  %s2801_s0 = inlined_call_operand.vmem [shape: f32[16,300], index: 0, kind: input, shape index: {}]   ;;  %s2802_s2 = inlined_call_operand.vmem [shape: f32[1,55], index: 2, kind: input, shape index: {}]   ;;  %s2803_s3 = inlined_call_operand.vmem [shape: f32[1,55], index: 3, kind: output, shape index: {}]  }
   0x1   :  { %v36_v0 = vld [vmem:[%s2800_s1 + $0x80] sm:$0xff]  ;;  %v37_v1 = vld [vmem:[%s2800_s1 + $0x88] sm:$0xff]  ;;  %v38_v7 = vld [vmem:[%s2800_s1 + $0x90] sm:$0xff]  ;;  %vm1574_vm4 = vcmask 442368  }
   0x2   :  { %v20_v2 = vld [vmem:[%s2800_s1] sm:$0xff]  ;;  %v125_v3 = vand.u32 4294901760, %v36_v0  ;;  %v128_v4 = vand.u32 4294901760, %v37_v1  ;;  %v21_v5 = vld [vmem:[%s2800_s1 + $0x8] sm:$0xff]  ;;  %v39_v8 = vld [vmem:[%s2800_s1 + $0x98] sm:$0xff]  ;;  %v131_v10 = vand.u32 4294901760, %v38_v7 }
   0x3   :  { %v77_v6 = vand.u32 4294901760, %v20_v2  ;;  %v80_v9 = vand.u32 4294901760, %v21_v5  ;;  %v134_v11 = vand.u32 4294901760, %v39_v8  ;;  %v22_v12 = vld [vmem:[%s2800_s1 + $0x10] sm:$0xff]  ;;  %v23_v17 = vld [vmem:[%s2800_s1 + $0x18] sm:$0xff]  ;;  %v40_v18 = vld [vmem:[%s2800_s1 + $0xa0] sm:$0xff] }
   0x4   :  { %v2264_v13 = vpack.c.bf16 %v128_v4, %v125_v3  ;;  %v2266_v14 = vsub.f32 %v36_v0, %v125_v3  ;;  %v2268_v15 = vsub.f32 %v37_v1, %v128_v4  ;;  %v2284_v22 = vsub.f32 %v38_v7, %v131_v10  ;;  %v41_v23 = vld [vmem:[%s2800_s1 + $0xa8] sm:$0xff]  ;;  %v24_v24 = vld [vmem:[%s2800_s1 + $0x20] sm:$0xff]  ;;  %v42_v33 = vld [vmem:[%s2800_s1 + $0xb0] sm:$0xff] }
   0x5   :  { %v2270_v16 = vsub.f32 %v20_v2, %v77_v6  ;;  %v2278_v19 = vpack.c.bf16 %v80_v9, %v77_v6  ;;  %v2280_v20 = vsub.f32 %v21_v5, %v80_v9  ;;  %v2282_v21 = vpack.c.bf16 %v134_v11, %v131_v10  ;;  %v25_v28 = vld [vmem:[%s2800_s1 + $0x28] sm:$0xff]  ;;  %v43_v38 = vld [vmem:[%s2800_s1 + $0xb8] sm:$0xff]  ;;  %v26_v43 = vld [vmem:[%s2800_s1 + $0x30] sm:$0xff] }
   0x6   :  { %1948 = vmatprep.subr.bf16.mxu1 %v2264_v13  ;;  %v2011_v25 = vpack.c.bf16 %v2268_v15, %v2266_v14  ;;  %v2295_v26 = vsub.f32 %v39_v8, %v134_v11  ;;  %v83_v27 = vand.u32 4294901760, %v22_v12  ;;  %v86_v31 = vand.u32 4294901760, %v23_v17  ;;  %v27_v44 = vld [vmem:[%s2800_s1 + $0x38] sm:$0xff]  ;;  %v44_v49 = vld [vmem:[%s2800_s1 + $0xc0] sm:$0xff]  ;;  %v45_v54 = vld [vmem:[%s2800_s1 + $0xc8] sm:$0xff] }
   0x7   :  { %1950 = vmatpush3.bf16.msra.mxu1 %v2278_v19  ;;  %v2013_v30 = vpack.c.bf16 %v2280_v20, %v2270_v16  ;;  %v137_v32 = vand.u32 4294901760, %v40_v18  ;;  %v140_v36 = vand.u32 4294901760, %v41_v23  ;;  %v89_v37 = vand.u32 4294901760, %v24_v24  ;;  %v28_v59 = vld [vmem:[%s2800_s1 + $0x40] sm:$0xff]  ;;  %v29_v60 = vld [vmem:[%s2800_s1 + $0x48] sm:$0xff]  ;;  %v46_v1 = vld [vmem:[%s2800_s1 + $0xd0] sm:$0xff] }
   0x8   :  { %2012 = vmatprep.subr.bf16.mxu0 %v2011_v25  ;;  %1952 = vmatprep.subr.bf16.mxu1 %v2282_v21  ;;  %v2308_v34 = vsub.f32 %v22_v12, %v83_v27  ;;  %v2015_v35 = vpack.c.bf16 %v2295_v26, %v2284_v22  ;;  %v2315_v39 = vpack.c.bf16 %v86_v31, %v83_v27  ;;  %v92_v42 = vand.u32 4294901760, %v25_v28  ;;  %v47_v6 = vld [vmem:[%s2800_s1 + $0xd8] sm:$0xff]  ;;  %v30_v11 = vld [vmem:[%s2800_s1 + $0x50] sm:$0xff]  ;;  %v48_v25 = vld [vmem:[%s2800_s1 + $0xe0] sm:$0xff] }
   0x9   :  { %2014 = vmatpush3.bf16.msra.mxu0 %v2013_v30  ;;  %v2317_v40 = vsub.f32 %v23_v17, %v86_v31  ;;  %v2319_v41 = vsub.f32 %v40_v18, %v137_v32  ;;  %v2327_v45 = vpack.c.bf16 %v140_v36, %v137_v32  ;;  %v2329_v46 = vsub.f32 %v41_v23, %v140_v36  ;;  %v31_v12 = vld [vmem:[%s2800_s1 + $0x58] sm:$0xff]  ;;  %v49_v32 = vld [vmem:[%s2800_s1 + $0xe8] sm:$0xff] }
   0xa   :  { %2016 = vmatprep.subr.bf16.mxu0 %v2015_v35  ;;  %v2331_v47 = vsub.f32 %v24_v24, %v89_v37  ;;  %v143_v48 = vand.u32 4294901760, %v42_v33  ;;  %v2339_v51 = vpack.c.bf16 %v92_v42, %v89_v37  ;;  %v2341_v52 = vsub.f32 %v25_v28, %v92_v42  ;;  %v33_v42 = vld [vmem:[%s2800_s1 + $0x68] sm:$0xff] }
   0xb   :  { %1954 = vmatpush3.bf16.msra.mxu1 %v2315_v39  ;;  %v2017_v50 = vpack.c.bf16 %v2317_v40, %v2308_v34  ;;  %v146_v53 = vand.u32 4294901760, %v43_v38  ;;  %v2019_v55 = vpack.c.bf16 %v2329_v46, %v2319_v41  ;;  %v95_v57 = vand.u32 4294901760, %v26_v43 }
   0xc   :  { %1956 = vmatprep.subr.bf16.mxu1 %v2327_v45  ;;  %v2349_v56 = vsub.f32 %v42_v33, %v143_v48  ;;  %v98_v58 = vand.u32 4294901760, %v27_v44  ;;  %v2021_v61 = vpack.c.bf16 %v2341_v52, %v2331_v47  ;;  %v149_v0 = vand.u32 4294901760, %v44_v49 }
   0xd   :  { %2018 = vmatpush3.bf16.msra.mxu0 %v2017_v50  ;;  %v2359_v62 = vpack.c.bf16 %v146_v53, %v143_v48  ;;  %v2361_v63 = vsub.f32 %v43_v38, %v146_v53  ;;  %v2368_v3 = vsub.f32 %v26_v43, %v95_v57  ;;  %v152_v5 = vand.u32 4294901760, %v45_v54  ;;  %v32_v38 = vld [vmem:[%s2800_s1 + $0x60] sm:$0xff]  ;;  %v50_v50 = vld [vmem:[%s2800_s1 + $0xf0] sm:$0xff] }
   0xe   :  { %2020 = vmatprep.subr.bf16.mxu0 %v2019_v55  ;;  %v2366_v2 = vpack.c.bf16 %v98_v58, %v95_v57  ;;  %v2370_v4 = vsub.f32 %v27_v44, %v98_v58  ;;  %v2378_v8 = vsub.f32 %v44_v49, %v149_v0  ;;  %v101_v9 = vand.u32 4294901760, %v28_v59  ;;  %v51_v58 = vld [vmem:[%s2800_s1 + $0xf8] sm:$0xff] }
   0xf   :  { %1958 = vmatpush3.bf16.msra.mxu1 %v2339_v51  ;;  %v2023_v7 = vpack.c.bf16 %v2361_v63, %v2349_v56  ;;  %v104_v10 = vand.u32 4294901760, %v29_v60  ;;  %v2388_v18 = vpack.c.bf16 %v152_v5, %v149_v0  ;;  %v2390_v23 = vsub.f32 %v45_v54, %v152_v5  ;;  %v35_v5 = vld [vmem:[%s2800_s1 + $0x78] sm:$0xff] }
  0x10   :  { %2822 = vst [vmem:[#allocation2_spill] sm:$0xff] %v2366_v2  ;;  %1960 = vmatprep.subr.bf16.mxu1 %v2359_v62  ;;  %v155_v24 = vand.u32 4294901760, %v46_v1  ;;  %v2025_v27 = vpack.c.bf16 %v2370_v4, %v2368_v3  ;;  %v2397_v28 = vsub.f32 %v28_v59, %v101_v9  ;;  %v158_v31 = vand.u32 4294901760, %v47_v6 }
  0x11   :  { %2823 = vst [vmem:[#allocation3_spill] sm:$0xff] %v2388_v18  ;;  %2022 = vmatpush3.bf16.msra.mxu0 %v2021_v61  ;;  %v2399_v30 = vsub.f32 %v29_v60, %v104_v10  ;;  %v2027_v33 = vpack.c.bf16 %v2390_v23, %v2378_v8  ;;  %v107_v36 = vand.u32 4294901760, %v30_v11  ;;  %v110_v37 = vand.u32 4294901760, %v31_v12 }
  0x12   :  { %2024 = vmatprep.subr.bf16.mxu0 %v2023_v7  ;;  %v2406_v35 = vsub.f32 %v46_v1, %v155_v24  ;;  %v2415_v43 = vpack.c.bf16 %v104_v10, %v101_v9  ;;  %v2419_v48 = vsub.f32 %v47_v6, %v158_v31  ;;  %v161_v49 = vand.u32 4294901760, %v48_v25  ;;  %v34_v1 = vld [vmem:[%s2800_s1 + $0x70] sm:$0xff] }
  0x13   :  { %1962 = vmatpush3.bf16.msra.mxu1 %v2366_v2  ;;  %v2029_v44 = vpack.c.bf16 %v2399_v30, %v2397_v28  ;;  %v2425_v53 = vpack.c.bf16 %v158_v31, %v155_v24  ;;  %v2427_v54 = vsub.f32 %v30_v11, %v107_v36  ;;  %v2429_v55 = vsub.f32 %v31_v12, %v110_v37  ;;  %v15_v11 = vld [vmem:[%s2801_s0 + $0x8] sm:$0xff] }
  0x14   :  { %2824 = vst [vmem:[#allocation4_spill] sm:$0xff] %v2415_v43  ;;  %1964 = vmatprep.subr.bf16.mxu1 %v2388_v18  ;;  %v164_v57 = vand.u32 4294901760, %v49_v32  ;;  %v2434_v59 = vpack.c.bf16 %v110_v37, %v107_v36  ;;  %v2436_v60 = vsub.f32 %v48_v25, %v161_v49  ;;  %v113_v61 = vand.u32 4294901760, %v32_v38  ;;  %v14_v37 = vld [vmem:[%s2801_s0] sm:$0xff] }
  0x15   :  { %2825 = vst [vmem:[#allocation5_spill] sm:$0xff] %v2425_v53  ;;  %2026 = vmatpush3.bf16.msra.mxu0 %v2025_v27  ;;  %v116_v0 = vand.u32 4294901760, %v33_v42  ;;  %v2031_v6 = vpack.c.bf16 %v2419_v48, %v2406_v35  ;;  %v2033_v7 = vpack.c.bf16 %v2429_v55, %v2427_v54  ;;  %v167_v10 = vand.u32 4294901760, %v50_v50 }
  0x16   :  { %2826 = vst [vmem:[#allocation6_spill] sm:$0xff] %v2434_v59  ;;  %2028 = vmatprep.subr.bf16.mxu0 %v2027_v33  ;;  %v2448_v9 = vsub.f32 %v49_v32, %v164_v57  ;;  %v2454_v12 = vpack.c.bf16 %v164_v57, %v161_v49  ;;  %v2456_v24 = vsub.f32 %v32_v38, %v113_v61  ;;  %v170_v27 = vand.u32 4294901760, %v51_v58 }
  0x17   :  { %1966 = vmatpush3.bf16.msra.mxu1 %v2415_v43  ;;  %v2458_v25 = vsub.f32 %v33_v42, %v116_v0  ;;  %v2461_v31 = vpack.c.bf16 %v116_v0, %v113_v61  ;;  %v2463_v32 = vsub.f32 %v50_v50, %v167_v10  ;;  %v119_v33 = vand.u32 4294901760, %v34_v1 }
  0x18   :  { %2827 = vst [vmem:[#allocation7_spill] sm:$0xff] %v2454_v12  ;;  %1968 = vmatprep.subr.bf16.mxu1 %v2425_v53  ;;  %v122_v36 = vand.u32 4294901760, %v35_v5  ;;  %v2035_v38 = vpack.c.bf16 %v2448_v9, %v2436_v60  ;;  %v2472_v49 = vsub.f32 %v51_v58, %v170_v27  ;;  %v2474_v57 = vand.u32 4294901760, %v15_v11 }
  0x19   :  { %2828 = vst [vmem:[#allocation8_spill] sm:$0xff] %v2461_v31  ;;  %2030 = vmatpush3.bf16.msra.mxu0 %v2029_v44  ;;  %v2037_v42 = vpack.c.bf16 %v2458_v25, %v2456_v24  ;;  %v2476_v50 = vpack.c.bf16 %v170_v27, %v167_v10  ;;  %v2478_v61 = vsub.f32 %v34_v1, %v119_v33  ;;  %v318_v17 = vand.u32 4294901760, %v2266_v14 }
  0x1a   :  { %2032 = vmatprep.subr.bf16.mxu0 %v2031_v6  ;;  %v2480_v0 = vsub.f32 %v35_v5, %v122_v36  ;;  %v2484_v44 = vpack.c.bf16 %v122_v36, %v119_v33  ;;  %v2487_v29 = vsub.f32 %v15_v11, %v2474_v57  ;;  %v325_v58 = vand.u32 4294901760, %v2268_v15 }
  0x1b   :  { %2829 = vst [vmem:[#allocation9_spill] sm:$0xff] %v2476_v50  ;;  %1970 = vmatpush3.bf16.msra.mxu1 %v2434_v59  ;;  %v2490_v53 = vand.u32 4294901760, %v14_v37  ;;  %v2039_v1 = vpack.c.bf16 %v2472_v49, %v2463_v32  ;;  %v319_v5 = vsub.f32 %v2266_v14, %v318_v17  ;;  %v2830_v6 = vand.u32 4294901760, %v2270_v16 }
  0x1c   :  { %1972 = vmatprep.subr.bf16.mxu1 %v2454_v12  ;;  %v2831_v27 = vand.u32 4294901760, %v2280_v20  ;;  %v2041_v33 = vpack.c.bf16 %v2480_v0, %v2478_v61  ;;  %v2816_v36 = vand.u32 4294901760, %v2487_v29  ;;  %v326_v12 = vsub.f32 %v2268_v15, %v325_v58  ;;  %572 = vmatprep.mubr.f32.mxu0 %v2487_v29 }
  0x1d   :  { %v207_v10 = vsub.f32 %v2270_v16, %v2830_v6  ;;  %2034 = vmatpush3.bf16.msra.mxu0 %v2033_v7  ;;  %v2507_v59 = vsub.f32 %v14_v37, %v2490_v53  ;;  %v320_v14 = vand.u32 4294901760, %v319_v5  ;;  %v2075_v18 = vpack.c.bf16 %v325_v58, %v318_v17 }
  0x1e   :  { %v214_v11 = vsub.f32 %v2280_v20, %v2831_v27  ;;  %2036 = vmatprep.subr.bf16.mxu0 %v2035_v38  ;;  %v175_v7 = vsub.f32 %v2487_v29, %v2816_v36  ;;  %v327_v27 = vand.u32 4294901760, %v326_v12  ;;  %v332_v15 = vand.u32 4294901760, %v2284_v22 }
  0x1f   :  { %v208_v6 = vand.u32 4294901760, %v207_v10  ;;  %1974 = vmatpush3.bf16.msra.mxu1 %v2461_v31  ;;  %v2819_v2 = vand.u32 4294901760, %v2507_v59  ;;  %v2832_v37 = vand.u32 4294901760, %v2270_v16  ;;  %v2833_v38 = vand.u32 4294901760, %v2280_v20 }
  0x20   :  { %v215_v43 = vand.u32 4294901760, %v214_v11  ;;  %1976 = vmatprep.subr.bf16.mxu1 %v2476_v50  ;;  %v339_v17 = vand.u32 4294901760, %v2295_v26  ;;  %v220_v58 = vand.u32 4294901760, %v2308_v34  ;;  %v227_v10 = vand.u32 4294901760, %v2317_v40 }
  0x21   :  { %v2077_v5 = vpack.c.bf16 %v2833_v38, %v2832_v37  ;;  %2038 = vmatpush3.bf16.msra.mxu0 %v2037_v42  ;;  %v176_v11 = vand.u32 4294901760, %v175_v7  ;;  %v1979_v12 = vpack.c.bf16 %v327_v27, %v320_v14  ;;  %v181_v36 = vsub.f32 %v2507_v59, %v2819_v2 }
  0x22   :  { %v333_v50 = vsub.f32 %v2284_v22, %v332_v15  ;;  %2040 = vmatprep.subr.bf16.mxu0 %v2039_v1  ;;  %v1981_v16 = vpack.c.bf16 %v215_v43, %v208_v6  ;;  %v340_v20 = vsub.f32 %v2295_v26, %v339_v17  ;;  %v221_v37 = vsub.f32 %v2308_v34, %v220_v58 }
  0x23   :  { %v228_v38 = vsub.f32 %v2317_v40, %v227_v10  ;;  %1978 = vmatpush3.bf16.msra.mxu1 %v2484_v44  ;;  %177 = vmatprep.mubr.f32.mxu1 %v176_v11  ;;  %v182_v42 = vand.u32 4294901760, %v181_v36  ;;  %v2079_v14 = vpack.c.bf16 %v339_v17, %v332_v15  ;;  %v346_v27 = vand.u32 4294901760, %v2319_v41 }
  0x24   :  { %v334_v7 = vand.u32 4294901760, %v333_v50  ;;  %1980 = vmatprep.subr.bf16.mxu1 %v1979_v12  ;;  %v341_v2 = vand.u32 4294901760, %v340_v20  ;;  %v222_v31 = vand.u32 4294901760, %v221_v37  ;;  %v353_v43 = vand.u32 4294901760, %v2329_v46 }
  0x25   :  { %v229_v22 = vand.u32 4294901760, %v228_v38  ;;  %2042 = vmatpush3.bf16.msra.mxu0 %v2041_v33  ;;  %v347_v26 = vsub.f32 %v2319_v41, %v346_v27  ;;  %v234_v34 = vand.u32 4294901760, %v2331_v47  ;;  %v241_v40 = vand.u32 4294901760, %v2341_v52 }
  0x26   :  { %v360_v1 = vand.u32 4294901760, %v2349_v56  ;;  %183 = vmatmul.mubr.f32.vlgmr.msra.gmra.mrb[0].mxu1 %v182_v42  ;;  %2076 = vmatprep.subr.bf16.mxu0 %v2075_v18  ;;  %v1983_v50 = vpack.c.bf16 %v341_v2, %v334_v7  ;;  %v2081_v36 = vpack.c.bf16 %v227_v10, %v220_v58  ;;  %v354_v6 = vsub.f32 %v2329_v46, %v353_v43 }
  0x27   :  { %v367_v15 = vand.u32 4294901760, %v2361_v63  ;;  %1982 = vmatpush3.bf16.msra.mxu1 %v1981_v16  ;;  %v1985_v17 = vpack.c.bf16 %v229_v22, %v222_v31  ;;  %v348_v11 = vand.u32 4294901760, %v347_v26  ;;  %v235_v33 = vsub.f32 %v2331_v47, %v234_v34 }
  0x28   :  { %v242_v41 = vsub.f32 %v2341_v52, %v241_v40  ;;  %575 = vmatmul.mubr.f32.vlgmr.msra.gmra.mrb[0].mxu0 %v2507_v59  ;;  %1984 = vmatprep.subr.bf16.mxu1 %v1983_v50  ;;  %v355_v12 = vand.u32 4294901760, %v354_v6  ;;  %v2083_v20 = vpack.c.bf16 %v353_v43, %v346_v27  ;;  %v361_v18 = vsub.f32 %v2349_v56, %v360_v1 }
  0x29   :  { %v368_v2 = vsub.f32 %v2361_v63, %v367_v15  ;;  %2078 = vmatpush3.bf16.msra.mxu0 %v2077_v5  ;;  %v236_v46 = vand.u32 4294901760, %v235_v33  ;;  %v248_v10 = vand.u32 4294901760, %v2368_v3  ;;  %v255_v31 = vand.u32 4294901760, %v2370_v4 }
  0x2a   :  { %v243_v58 = vand.u32 4294901760, %v242_v41  ;;  %2080 = vmatprep.subr.bf16.mxu0 %v2079_v14  ;;  %v1987_v47 = vpack.c.bf16 %v355_v12, %v348_v11  ;;  %v2085_v16 = vpack.c.bf16 %v241_v40, %v234_v34  ;;  %v362_v52 = vand.u32 4294901760, %v361_v18 }
  0x2b   :  { %v369_v37 = vand.u32 4294901760, %v368_v2  ;;  %1986 = vmatpush3.bf16.msra.mxu1 %v1985_v17  ;;  %v249_v42 = vsub.f32 %v2368_v3, %v248_v10  ;;  %v256_v56 = vsub.f32 %v2370_v4, %v255_v31  ;;  %v2087_v7 = vpack.c.bf16 %v367_v15, %v360_v1  ;;  %v18_v2 = vld [vmem:[%s2801_s0 + $0x20] sm:$0xff] }
  0x2c   :  { %v1989_v38 = vpack.c.bf16 %v243_v58, %v236_v46  ;;  %1988 = vmatprep.subr.bf16.mxu1 %v1987_v47  ;;  %v374_v5 = vand.u32 4294901760, %v2378_v8  ;;  %v381_v27 = vand.u32 4294901760, %v2390_v23  ;;  %v262_v22 = vand.u32 4294901760, %v2397_v28 }
  0x2d   :  { %v1991_v63 = vpack.c.bf16 %v369_v37, %v362_v52  ;;  %2082 = vmatpush3.bf16.msra.mxu0 %v2081_v36  ;;  %v250_v14 = vand.u32 4294901760, %v249_v42  ;;  %v257_v43 = vand.u32 4294901760, %v256_v56  ;;  %v269_v26 = vand.u32 4294901760, %v2399_v30 }
  0x2e   :  { %v388_v34 = vand.u32 4294901760, %v2406_v35  ;;  %2084 = vmatprep.subr.bf16.mxu0 %v2083_v20  ;;  %v2089_v3 = vpack.c.bf16 %v255_v31, %v248_v10  ;;  %v375_v4 = vsub.f32 %v2378_v8, %v374_v5  ;;  %v382_v40 = vsub.f32 %v2390_v23, %v381_v27 }
  0x2f   :  { %v263_v1 = vsub.f32 %v2397_v28, %v262_v22  ;;  %1990 = vmatpush3.bf16.msra.mxu1 %v1989_v38  ;;  %v1993_v50 = vpack.c.bf16 %v257_v43, %v250_v14  ;;  %v270_v6 = vsub.f32 %v2399_v30, %v269_v26  ;;  %v2091_v15 = vpack.c.bf16 %v381_v27, %v374_v5 }
  0x30   :  { %v389_v36 = vsub.f32 %v2406_v35, %v388_v34  ;;  %1992 = vmatprep.subr.bf16.mxu1 %v1991_v63  ;;  %v376_v17 = vand.u32 4294901760, %v375_v4  ;;  %v383_v11 = vand.u32 4294901760, %v382_v40  ;;  %v395_v41 = vand.u32 4294901760, %v2419_v48 }
  0x31   :  { %v264_v33 = vand.u32 4294901760, %v263_v1  ;;  %2086 = vmatpush3.bf16.msra.mxu0 %v2085_v16  ;;  %v271_v12 = vand.u32 4294901760, %v270_v6  ;;  %v2093_v8 = vpack.c.bf16 %v269_v26, %v262_v22  ;;  %v276_v23 = vand.u32 4294901760, %v2427_v54 }
  0x32   :  { %v283_v28 = vand.u32 4294901760, %v2429_v55  ;;  %2088 = vmatprep.subr.bf16.mxu0 %v2087_v7  ;;  %v1995_v20 = vpack.c.bf16 %v383_v11, %v376_v17  ;;  %v390_v18 = vand.u32 4294901760, %v389_v36  ;;  %v396_v30 = vsub.f32 %v2419_v48, %v395_v41 }
  0x33   :  { %v402_v35 = vand.u32 4294901760, %v2436_v60  ;;  %1994 = vmatpush3.bf16.msra.mxu1 %v1993_v50  ;;  %v1997_v46 = vpack.c.bf16 %v271_v12, %v264_v33  ;;  %v277_v58 = vsub.f32 %v2427_v54, %v276_v23  ;;  %v2095_v31 = vpack.c.bf16 %v395_v41, %v388_v34  ;;  %v17_v54 = vld [vmem:[%s2801_s0 + $0x18] sm:$0xff]  ;;  %v52_v33 = vld [vmem:[%s2800_s1 + $0x100] sm:$0xff] }
  0x34   :  { %v284_v10 = vsub.f32 %v2429_v55, %v283_v28  ;;  %1996 = vmatprep.subr.bf16.mxu1 %v1995_v20  ;;  %v397_v47 = vand.u32 4294901760, %v396_v30  ;;  %v409_v52 = vand.u32 4294901760, %v2448_v9  ;;  %v290_v48 = vand.u32 4294901760, %v2456_v24 }
  0x35   :  { %v403_v16 = vsub.f32 %v2436_v60, %v402_v35  ;;  %2090 = vmatpush3.bf16.msra.mxu0 %v2089_v3  ;;  %v278_v37 = vand.u32 4294901760, %v277_v58  ;;  %v297_v42 = vand.u32 4294901760, %v2458_v25  ;;  %v2573_v56 = vand.u32 4294901760, %v18_v2 }
  0x36   :  { %v285_v38 = vand.u32 4294901760, %v284_v10  ;;  %2092 = vmatprep.subr.bf16.mxu0 %v2091_v15  ;;  %v1999_v55 = vpack.c.bf16 %v397_v47, %v390_v18  ;;  %v410_v60 = vsub.f32 %v2448_v9, %v409_v52  ;;  %v291_v63 = vsub.f32 %v2456_v24, %v290_v48  ;;  %v57_v10 = vld [vmem:[%s2800_s1 + $0x128] sm:$0xf] }
  0x37   :  { %v404_v7 = vand.u32 4294901760, %v403_v16  ;;  %1998 = vmatpush3.bf16.msra.mxu1 %v1997_v46  ;;  %v2097_v27 = vpack.c.bf16 %v283_v28, %v276_v23  ;;  %v298_v22 = vsub.f32 %v2458_v25, %v297_v42  ;;  %v2582_v14 = vsub.f32 %v18_v2, %v2573_v56  ;;  %v55_v28 = vld [vmem:[%s2800_s1 + $0x118] sm:$0xff] }
  0x38   :  { %v2001_v5 = vpack.c.bf16 %v285_v38, %v278_v37  ;;  %2000 = vmatprep.subr.bf16.mxu1 %v1999_v55  ;;  %v411_v43 = vand.u32 4294901760, %v410_v60  ;;  %v292_v26 = vand.u32 4294901760, %v291_v63  ;;  %v2099_v34 = vpack.c.bf16 %v409_v52, %v402_v35  ;;  %v19_v37 = vld [vmem:[%s2801_s0 + $0x28] sm:$0xff] }
  0x39   :  { %v2584_v3 = vand.u32 4294901760, %v17_v54  ;;  %2094 = vmatpush3.bf16.msra.mxu0 %v2093_v8  ;;  %v299_v9 = vand.u32 4294901760, %v298_v22  ;;  %v189_v24 = vand.u32 4294901760, %v2582_v14  ;;  %v416_v4 = vand.u32 4294901760, %v2463_v32  ;;  %581 = vmatprep.mubr.f32.mxu0 %v2582_v14 }
  0x3a   :  { %v423_v40 = vand.u32 4294901760, %v2472_v49  ;;  %2096 = vmatprep.subr.bf16.mxu0 %v2095_v31  ;;  %v2003_v25 = vpack.c.bf16 %v411_v43, %v404_v7  ;;  %v304_v50 = vand.u32 4294901760, %v2478_v61  ;;  %v311_v6 = vand.u32 4294901760, %v2480_v0  ;;  %v16_v31 = vld [vmem:[%s2801_s0 + $0x10] sm:$0xff] }
  0x3b   :  { %v2591_v1 = vsub.f32 %v17_v54, %v2584_v3  ;;  %2002 = vmatpush3.bf16.msra.mxu1 %v2001_v5  ;;  %v2005_v15 = vpack.c.bf16 %v299_v9, %v292_v26  ;;  %v190_v36 = vsub.f32 %v2582_v14, %v189_v24  ;;  %v417_v17 = vsub.f32 %v2463_v32, %v416_v4  ;;  %v53_v32 = vld [vmem:[%s2800_s1 + $0x108] sm:$0xff] }
  0x3c   :  { %v424_v11 = vsub.f32 %v2472_v49, %v423_v40  ;;  %2004 = vmatprep.subr.bf16.mxu1 %v2003_v25  ;;  %v2101_v41 = vpack.c.bf16 %v297_v42, %v290_v48  ;;  %v305_v8 = vsub.f32 %v2478_v61, %v304_v50  ;;  %v312_v23 = vsub.f32 %v2480_v0, %v311_v6  ;;  %v54_v49 = vld [vmem:[%s2800_s1 + $0x110] sm:$0xff]  ;;  %v56_v0 = vld [vmem:[%s2800_s1 + $0x120] sm:$0xff] }
  0x3d   :  { %v195_v12 = vand.u32 4294901760, %v2591_v1  ;;  %584 = vmatmul.mubr.f32.gmra.mrb[2].mxu0 %v2591_v1  ;;  %v191_v20 = vand.u32 4294901760, %v190_v36  ;;  %v418_v18 = vand.u32 4294901760, %v417_v17  ;;  %v2103_v30 = vpack.c.bf16 %v423_v40, %v416_v4 }
  0x3e   :  { %2098 = vmatpush3.bf16.msra.mxu0 %v2097_v27  ;;  %v425_v61 = vand.u32 4294901760, %v424_v11  ;;  %869 = vmatprep.mubr.f32.mxu0 %v2474_v57  ;;  %v306_v2 = vand.u32 4294901760, %v305_v8  ;;  %v313_v46 = vand.u32 4294901760, %v312_v23  ;;  %v995_v58 = vand.u32 4294901760, %v52_v33 }
  0x3f   :  { %2100 = vmatprep.subr.bf16.mxu0 %v2099_v34  ;;  %v196_v35 = vsub.f32 %v2591_v1, %v195_v12  ;;  %2006 = vmatpush3.bf16.msra.mxu1 %v2005_v15  ;;  %v998_v16 = vand.u32 4294901760, %v53_v32  ;;  %v1001_v52 = vand.u32 4294901760, %v54_v49  ;;  %v1004_v48 = vand.u32 4294901760, %v55_v28 }
  0x40   :  { %192 = vmatprep.mubr.f32.mxu1 %v191_v20  ;;  %v2007_v47 = vpack.c.bf16 %v425_v61, %v418_v18  ;;  %v2009_v42 = vpack.c.bf16 %v313_v46, %v306_v2  ;;  %v2105_v54 = vpack.c.bf16 %v311_v6, %v304_v50  ;;  %v74_v7 = vsel %vm72_vm0, %v57_v10, 0 }
  0x41   :  { %v197_v38 = vand.u32 4294901760, %v196_v35  ;;  %v2632_v55 = vpack.c.bf16 %v998_v16, %v995_v58  ;;  %v1007_v60 = vand.u32 4294901760, %v56_v0  ;;  %v67_v63 = vsel %vm65_vm1, %v16_v31, 0 }
  0x42   :  { %2102 = vmatpush3.bf16.msra.mxu0 %v2101_v41  ;;  %2008 = vmatprep.subr.bf16.mxu1 %v2007_v47  ;;  %v70_v5 = vsel %vm65_vm1, %v19_v37, 0  ;;  %v2637_v27 = vand.u32 4294901760, %v67_v63  ;;  %v2639_v22 = vsub.f32 %v52_v33, %v995_v58  ;;  %v2641_v43 = vsub.f32 %v53_v32, %v998_v16 }
  0x43   :  { %198 = vmatmul.mubr.f32.gmra.mrb[2].mxu1 %v197_v38  ;;  %2104 = vmatprep.subr.bf16.mxu0 %v2103_v30  ;;  %v2644_v26 = vpack.c.bf16 %v1004_v48, %v1001_v52  ;;  %v2646_v34 = vand.u32 4294901760, %v70_v5  ;;  %v2648_v9 = vsub.f32 %v54_v49, %v1001_v52  ;;  %v2650_v4 = vsub.f32 %v55_v28, %v1004_v48 }
  0x44   :  { %2010 = vmatpush3.bf16.msra.mxu1 %v2009_v42  ;;  %428 = vmatprep.mubr.f32.mxu1 %v2474_v57  ;;  %v1010_v40 = vand.u32 4294901760, %v74_v7  ;;  %v2654_v25 = vsub.f32 %v67_v63, %v2637_v27  ;;  %v1088_v50 = vand.u32 4294901760, %v2639_v22  ;;  %v1095_v6 = vand.u32 4294901760, %v2641_v43  ;;  %v2835_v42 = vld [vmem:[#allocation2_spill] sm:$0xff]  ;;  %v2838_v63 = vld [vmem:[#allocation5_spill] sm:$0xff] }
  0x45   :  { %2044 = vmatprep.subr.bf16.mxu1 %v2264_v13  ;;  %v2659_v15 = vsub.f32 %v70_v5, %v2646_v34  ;;  %v1102_v36 = vand.u32 4294901760, %v2648_v9  ;;  %v1109_v17 = vand.u32 4294901760, %v2650_v4  ;;  %v2663_v11 = vsub.f32 %v56_v0, %v1007_v60 }
  0x46   :  { %2106 = vmatpush3.bf16.msra.mxu0 %v2105_v54  ;;  %v1067_v33 = vand.u32 4294901760, %v2654_v25  ;;  %v1089_v41 = vsub.f32 %v2639_v22, %v1088_v50  ;;  %v1096_v8 = vsub.f32 %v2641_v43, %v1095_v6  ;;  %v2674_v23 = vsub.f32 %v74_v7, %v1010_v40  ;;  %v2836_v54 = vld [vmem:[#allocation3_spill] sm:$0xff] }
  0x47   :  { %430 = vmatmul.mubr.f32.vlgmr.msra.gmra.mrb[4].mxu1 %v2490_v53  ;;  %2140 = vmatprep.subr.bf16.mxu0 %v2632_v55  ;;  %v1077_v49 = vand.u32 4294901760, %v2659_v15  ;;  %v2686_v28 = vpack.c.bf16 %v1010_v40, %v1007_v60  ;;  %v1103_v20 = vsub.f32 %v2648_v9, %v1102_v36  ;;  %v1110_v18 = vsub.f32 %v2650_v4, %v1109_v17  ;;  %v2837_v60 = vld [vmem:[#allocation4_spill] sm:$0xff]  ;;  %v2839_v40 = vld [vmem:[#allocation6_spill] sm:$0xff] }
  0x48   :  { %2046 = vmatpush3.bf16.msra.mxu1 %v2278_v19  ;;  %435 = vmatprep.mubr.f32.mxu1 %v2573_v56  ;;  %v1068_v32 = vsub.f32 %v2654_v25, %v1067_v33  ;;  %v1116_v61 = vand.u32 4294901760, %v2663_v11  ;;  %v1090_v0 = vand.u32 4294901760, %v1089_v41  ;;  %v1097_v35 = vand.u32 4294901760, %v1096_v8  ;;  %v2840_v41 = vld [vmem:[#allocation7_spill] sm:$0xff] }
  0x49   :  { %871 = vmatmul.mubr.f32.vlgmr.msra.gmra.mrb[4].mxu0 %v2490_v53  ;;  %2048 = vmatprep.subr.bf16.mxu1 %v2282_v21  ;;  %v1123_v2 = vand.u32 4294901760, %v2674_v23  ;;  %v2834_v46 = vand.u32 4294901760, %v2487_v29  ;;  %v1078_v58 = vsub.f32 %v2659_v15, %v1077_v49  ;;  %v1104_v29 = vand.u32 4294901760, %v1103_v20  ;;  %v2842_v20 = vld [vmem:[#allocation9_spill] sm:$0xff] }
  0x4a   :  { %2142 = vmatpush3.bf16.msra.mxu0 %v2632_v55  ;;  %876 = vmatprep.mubr.f32.mxu0 %v2573_v56  ;;  %v1069_v30 = vand.u32 4294901760, %v1068_v32  ;;  %v1117_v10 = vsub.f32 %v2663_v11, %v1116_v61  ;;  %v2151_v31 = vpack.c.bf16 %v1097_v35, %v1090_v0  ;;  %v1111_v47 = vand.u32 4294901760, %v1110_v18  ;;  %v2841_v32 = vld [vmem:[#allocation8_spill] sm:$0xff] }
  0x4b   :  { %437 = vmatmul.mubr.f32.gmra.mrb[6].mxu1 %v2584_v3  ;;  %2144 = vmatprep.subr.bf16.mxu0 %v2644_v26  ;;  %v1124_v16 = vsub.f32 %v2674_v23, %v1123_v2  ;;  %v1079_v52 = vand.u32 4294901760, %v1078_v58  ;;  %v2163_v5 = vpack.c.bf16 %v2641_v43, %v2639_v22  ;;  %v2167_v8 = vpack.c.bf16 %v2650_v4, %v2648_v9 }
  0x4c   :  { %2050 = vmatpush3.bf16.msra.mxu1 %v2315_v39  ;;  %688 = vmatprep.mubr.f32.mxu1 %v2834_v46  ;;  %v2155_v48 = vpack.c.bf16 %v1111_v47, %v1104_v29  ;;  %v1118_v37 = vand.u32 4294901760, %v1117_v10  ;;  %v2171_v18 = vpack.c.bf16 %v2674_v23, %v2663_v11 }
  0x4d   :  { %2052 = vmatprep.subr.bf16.mxu1 %v2327_v45  ;;  %878 = vmatmul.mubr.f32.gmra.mrb[6].mxu0 %v2584_v3  ;;  %v1125_v38 = vand.u32 4294901760, %v1124_v16 }
  0x4e   :  { %2146 = vmatpush3.bf16.msra.mxu0 %v2644_v26  ;;  %1869 = vmatprep.mubr.f32.mxu0 %v1069_v30  ;;  %v2843_v30 = vand.u32 4294901760, %v2507_v59 }
  0x4f   :  { %2148 = vmatprep.subr.bf16.mxu0 %v2686_v28  ;;  %v2159_v7 = vpack.c.bf16 %v1125_v38, %v1118_v37 }
  0x50   :  { %2054 = vmatpush3.bf16.msra.mxu1 %v2339_v51 }
  0x51   :  { %2056 = vmatprep.subr.bf16.mxu1 %v2359_v62 }
  0x52   :  { %2150 = vmatpush3.bf16.msra.mxu0 %v2686_v28 }
  0x53   :  { %2152 = vmatprep.subr.bf16.mxu0 %v2151_v31 }
  0x54   :  { %2058 = vmatpush3.bf16.msra.mxu1 %v2835_v42 }
  0x55   :  { %1870 = vmatmul.mubr.f32.vlgmr.msra.gmra.mrb[8].mxu0 %v1079_v52  ;;  %2060 = vmatprep.subr.bf16.mxu1 %v2836_v54 }
  0x56   :  { %2154 = vmatpush3.bf16.msra.mxu0 %v2151_v31  ;;  %1884 = vmatprep.mubr.f32.mxu0 %v2637_v27 }
  0x57   :  { %2156 = vmatprep.subr.bf16.mxu0 %v2155_v48 }
  0x58   :  { %2062 = vmatpush3.bf16.msra.mxu1 %v2837_v60 }
  0x59   :  { %2064 = vmatprep.subr.bf16.mxu1 %v2838_v63 }
  0x5a   :  { %2158 = vmatpush3.bf16.msra.mxu0 %v2155_v48 }
  0x5b   :  { %2160 = vmatprep.subr.bf16.mxu0 %v2159_v7 }
  0x5c   :  { %2066 = vmatpush3.bf16.msra.mxu1 %v2839_v40 }
  0x5d   :  { %2068 = vmatprep.subr.bf16.mxu1 %v2840_v41 }
  0x5e   :  { %2162 = vmatpush3.bf16.msra.mxu0 %v2159_v7 }
  0x5f   :  { %2164 = vmatprep.subr.bf16.mxu0 %v2163_v5 }
  0x60   :  { %2070 = vmatpush3.bf16.msra.mxu1 %v2841_v32 }
  0x61   :  { %1885 = vmatmul.mubr.f32.vlgmr.msra.gmra.mrb[8].mxu0 %v2646_v34  ;;  %2072 = vmatprep.subr.bf16.mxu1 %v2842_v20 }
  0x62   :  { %2166 = vmatpush3.bf16.msra.mxu0 %v2163_v5  ;;  %1899 = vmatprep.mubr.f32.mxu0 %v2654_v25 }
  0x63   :  { %2168 = vmatprep.subr.bf16.mxu0 %v2167_v8 }
  0x64   :  { %2074 = vmatpush3.bf16.msra.mxu1 %v2484_v44 }
  0x65   :  { %2108 = vmatprep.subr.bf16.mxu1 %v2264_v13  ;;  %v2187_v13 = vpack.c.bf16 %v1095_v6, %v1088_v50 }
  0x66   :  { %2170 = vmatpush3.bf16.msra.mxu0 %v2167_v8 }
  0x67   :  { %692 = vmatmul.mubr.f32.vlgmr.msra.gmra.mrb[8].mxu1 %v2843_v30  ;;  %2172 = vmatprep.subr.bf16.mxu0 %v2171_v18 }
  0x68   :  { %2110 = vmatpush3.bf16.msra.mxu1 %v2278_v19  ;;  %699 = vmatprep.mubr.f32.mxu1 %v189_v24  ;;  %v2191_v19 = vpack.c.bf16 %v1109_v17, %v1102_v36 }
  0x69   :  { %2112 = vmatprep.subr.bf16.mxu1 %v2282_v21  ;;  %v2195_v21 = vpack.c.bf16 %v1123_v2, %v1116_v61 }
  0x6a   :  { %2174 = vmatpush3.bf16.msra.mxu0 %v2171_v18 }
  0x6b   :  { %703 = vmatmul.mubr.f32.gmra.mrb[10].mxu1 %v195_v12  ;;  %2176 = vmatprep.subr.bf16.mxu0 %v2632_v55 }
  0x6c   :  { %2114 = vmatpush3.bf16.msra.mxu1 %v2315_v39  ;;  %980 = vmatprep.mubr.f32.mxu1 %v2474_v57 }
  0x6d   :  { %1900 = vmatmul.mubr.f32.vlgmr.msra.gmra.mrb[8].mxu0 %v2659_v15  ;;  %2116 = vmatprep.subr.bf16.mxu1 %v2327_v45 }
  0x6e   :  { %2178 = vmatpush3.bf16.msra.mxu0 %v2632_v55  ;;  %1914 = vmatprep.mubr.f32.mxu0 %v1067_v33 }
  0x6f   :  { %2180 = vmatprep.subr.bf16.mxu0 %v2644_v26 }
  0x70   :  { %2118 = vmatpush3.bf16.msra.mxu1 %v2339_v51 }
  0x71   :  { %2120 = vmatprep.subr.bf16.mxu1 %v2359_v62 }
  0x72   :  { %2182 = vmatpush3.bf16.msra.mxu0 %v2644_v26 }
  0x73   :  { %2184 = vmatprep.subr.bf16.mxu0 %v2686_v28 }
  0x74   :  { %2122 = vmatpush3.bf16.msra.mxu1 %v2835_v42 }
  0x75   :  { %2124 = vmatprep.subr.bf16.mxu1 %v2836_v54 }
  0x76   :  { %2186 = vmatpush3.bf16.msra.mxu0 %v2686_v28 }
  0x77   :  { %2188 = vmatprep.subr.bf16.mxu0 %v2187_v13 }
  0x78   :  { %2126 = vmatpush3.bf16.msra.mxu1 %v2837_v60 }
  0x79   :  { %1915 = vmatmul.mubr.f32.vlgmr.msra.gmra.mrb[8].mxu0 %v1077_v49  ;;  %2128 = vmatprep.subr.bf16.mxu1 %v2838_v63 }
  0x7a   :  { %2190 = vmatpush3.bf16.msra.mxu0 %v2187_v13  ;;  %1929 = vmatprep.mubr.f32.mxu0 %v2637_v27 }
  0x7b   :  { %2192 = vmatprep.subr.bf16.mxu0 %v2191_v19 }
  0x7c   :  { %2130 = vmatpush3.bf16.msra.mxu1 %v2839_v40 }
  0x7d   :  { %2132 = vmatprep.subr.bf16.mxu1 %v2840_v41 }
  0x7e   :  { %2194 = vmatpush3.bf16.msra.mxu0 %v2191_v19 }
  0x7f   :  { %2196 = vmatprep.subr.bf16.mxu0 %v2195_v21 }
  0x80   :  { %2134 = vmatpush3.bf16.msra.mxu1 %v2841_v32 }
  0x81   :  { %2136 = vmatprep.subr.bf16.mxu1 %v2842_v20 }
  0x82   :  { %2198 = vmatpush3.bf16.msra.mxu0 %v2195_v21 }
  0x83   :  { %2200 = vmatprep.subr.bf16.mxu0 %v2632_v55 }
  0x84   :  { %2138 = vmatpush3.bf16.msra.mxu1 %v2484_v44 }
  0x85   :  { %1930 = vmatmul.mubr.f32.vlgmr.msra.gmra.mrb[8].mxu0 %v2646_v34 }
  0x86   :  { %2202 = vmatpush3.bf16.msra.mxu0 %v2632_v55  ;;  %1944 = vmatprep.mubr.f32.mxu0 %v2637_v27 }
  0x87   :  { %982 = vmatmul.mubr.f32.vlgmr.msra.gmra.mrb[12].mxu1 %v2490_v53  ;;  %2204 = vmatprep.subr.bf16.mxu0 %v2644_v26 }
  0x88   :  { %987 = vmatprep.mubr.f32.mxu1 %v2573_v56 }
  0x8a   :  { %2206 = vmatpush3.bf16.msra.mxu0 %v2644_v26 }
  0x8b   :  { %989 = vmatmul.mubr.f32.gmra.mrb[14].mxu1 %v2584_v3  ;;  %2208 = vmatprep.subr.bf16.mxu0 %v2686_v28  ;;  %v1580_v3 = vld [vmem:[%s2802_s2] ss:$0 sm:$0xff] }
  0x8e   :  { %2210 = vmatpush3.bf16.msra.mxu0 %v2686_v28 }
  0x91   :  { %1945 = vmatmul.mubr.f32.vlgmr.msra.gmra.mrb[8].mxu0 %v2646_v34 }
  0xf9   :  { %v1613_v39 = vpop.f32.mrb[0].mxu1 }
  0xfa   :  { %v1614_v45 = vpop.f32.mrb[1].mxu1 }
  0xfb   :  { %v1689_v51 = vpop.f32.mrb[0].mxu0  ;;  %v1615_v62 = vadd.f32 %v1614_v45, %v1613_v39 }
  0xfc   :  { %v1690_v59 = vpop.f32.mrb[1].mxu0 }
  0xfd   :  { %v1691_v53 = vadd.f32 %v1690_v59, %v1689_v51  ;;  %v185_v27 = vadd.f32 %v1615_v62, %v1580_v3 }
 0x110   :  { %v1692_v57 = vpop.f32.mrb[2].mxu0 }
 0x111   :  { %v1693_v44 = vpop.f32.mrb[3].mxu0 }
 0x112   :  { %v1694_v14 = vadd.f32 %v1693_v44, %v1692_v57 }
 0x116   :  { %v1616_v56 = vpop.f32.mrb[2].mxu1 }
 0x117   :  { %v1617_v24 = vpop.f32.mrb[3].mxu1 }
 0x118   :  { %v1618_v1 = vadd.f32 %v1617_v24, %v1616_v56 }
 0x11a   :  { %v1651_v12 = vpop.f32.mrb[4].mxu1  ;;  %v200_v50 = vadd.f32 %v1618_v1, %v1580_v3 }
 0x11b   :  { %v1652_v55 = vpop.f32.mrb[5].mxu1 }
 0x11c   :  { %v1653_v22 = vadd.f32 %v1652_v55, %v1651_v12  ;;  %v1765_v43 = vpop.f32.mrb[4].mxu0 }
 0x11d   :  { %v1766_v26 = vpop.f32.mrb[5].mxu0 }
 0x11e   :  { %v432_v34 = vadd.f32 %v1653_v22, %v185_v27  ;;  %v1767_v9 = vadd.f32 %v1766_v26, %v1765_v43  ;;  %v1654_v4 = vpop.f32.mrb[6].mxu1 }
 0x11f   :  { %v1655_v25 = vpop.f32.mrb[7].mxu1 }
 0x120   :  { %v1656_v6 = vadd.f32 %v1655_v25, %v1654_v4  ;;  %v1768_v15 = vpop.f32.mrb[6].mxu0  ;;  %v577_v36 = vadd.f32 %v1691_v53, %v432_v34 }
 0x121   :  { %v1769_v17 = vpop.f32.mrb[7].mxu0 }
 0x122   :  { %v439_v11 = vadd.f32 %v1656_v6, %v200_v50  ;;  %v1770_v33 = vadd.f32 %v1769_v17, %v1768_v15 }
 0x124   :  { %v586_v23 = vadd.f32 %v1694_v14, %v439_v11 }
 0x13a   :  { %v1727_v49 = vpop.f32.mrb[8].mxu1 }
 0x13b   :  { %v1728_v28 = vpop.f32.mrb[9].mxu1 }
 0x13c   :  { %v1729_v61 = vadd.f32 %v1728_v28, %v1727_v49 }
 0x13e   :  { %v694_v0 = vadd.f32 %v1729_v61, %v577_v36  ;;  %v1730_v35 = vpop.f32.mrb[10].mxu1 }
 0x13f   :  { %v1731_v2 = vpop.f32.mrb[11].mxu1 }
 0x140   :  { %v1732_v46 = vadd.f32 %v1731_v2, %v1730_v35  ;;  %v873_v58 = vadd.f32 %v1767_v9, %v694_v0 }
 0x142   :  { %v705_v10 = vadd.f32 %v1732_v46, %v586_v23 }
 0x144   :  { %v880_v31 = vadd.f32 %v1770_v33, %v705_v10 }
 0x15a   :  { %v1803_v29 = vpop.f32.mrb[12].mxu1 }
 0x15b   :  { %v1804_v47 = vpop.f32.mrb[13].mxu1 }
 0x15c   :  { %v1805_v16 = vadd.f32 %v1804_v47, %v1803_v29 }
 0x15e   :  { %v1806_v52 = vpop.f32.mrb[14].mxu1  ;;  %v984_v48 = vadd.f32 %v1805_v16, %v873_v58 }
 0x15f   :  { %v1807_v37 = vpop.f32.mrb[15].mxu1 }
 0x160   :  { %v1808_v38 = vadd.f32 %v1807_v37, %v1806_v52 }
 0x162   :  { %v991_v42 = vadd.f32 %v1808_v38, %v880_v31 }
 0x164   :  { %v1946_v54 = vpop.f32.mrb[8].mxu0 }
 0x165   :  { %v2211_v7 = vadd.f32 %v1946_v54, %v991_v42  ;;  %v1538_v60 = vpop.f32.mrb[9].mxu0 }
 0x166   :  { %v2212_v63 = vadd.f32 %v1538_v60, %v984_v48 }
 0x167   :  { %v1565_v5 = vsel %vm1548_vm2, %v2211_v7, -inf }
 0x168   :  { %v1566_v40 = vrot.slane %v1565_v5, 4  ;;  %v1549_v41 = vsel %vm1548_vm2, %v2212_v63, -inf  ;;  %v1557_v8 = vsel %vm1556_vm3, %v2212_v63, -inf }
 0x169   :  { %v1550_v32 = vrot.slane %v1549_v41, 4  ;;  %v1558_v20 = vrot.slane %v1557_v8, 4 }
 0x16a   :  { %v1567_v18 = vmax.f32 %v1565_v5, %v1566_v40 }
 0x16b   :  { %v1551_v30 = vmax.f32 %v1549_v41, %v1550_v32  ;;  %v1559_v13 = vmax.f32 %v1557_v8, %v1558_v20 }
 0x16c   :  { %v1568_v19 = vrot.slane %v1567_v18, 2 }
 0x16d   :  { %v1552_v21 = vrot.slane %v1551_v30, 2  ;;  %v1560_v39 = vrot.slane %v1559_v13, 2 }
 0x16e   :  { %v1569_v45 = vmax.f32 %v1567_v18, %v1568_v19 }
 0x16f   :  { %v1553_v51 = vmax.f32 %v1551_v30, %v1552_v21  ;;  %v1561_v62 = vmax.f32 %v1559_v13, %v1560_v39 }
 0x170   :  { %v1570_v59 = vrot.slane %v1569_v45, 1 }
 0x171   :  { %v1554_v53 = vrot.slane %v1553_v51, 1  ;;  %v1562_v57 = vrot.slane %v1561_v62, 1 }
 0x172   :  { %v1571_v56 = vmax.f32 %v1569_v45, %v1570_v59 }
 0x173   :  { %v1555_v44 = vmax.f32 %v1553_v51, %v1554_v53  ;;  %v1563_v14 = vmax.f32 %v1561_v62, %v1562_v57 }
 0x175   :  { %v1564_v24 = vmax.f32 %v1555_v44, %v1563_v14 }
 0x177   :  { %v1572_v1 = vmax.f32 %v1564_v24, %v1571_v56 }
 0x179   :  { %v1573_v3 = vmul.f32 0.2, %v1572_v1 }
 0x17b   :  { %1575 = vst.msk [vmem:[%s2803_s3] sm:$0x1] %vm1574_vm4, %v1573_v3 }

</bundles_post_ra>
